<compile_context>
chip_gen: v7x
topology: tpu7x:2x2x1
jax: 0.10.0
libtpu: 0.0.40
codegen_flags: <defaults>
</compile_context>

<pallas_src>
import math
import functools

import numpy as np
import jax
import jax.numpy as jnp
from jax.experimental import pallas as pl
from jax.experimental.pallas import tpu as pltpu


def _synthesis_kernel(styles_ref, wgt_ref, x_ref, *rest,
                      H, W, KH, KW, act_gain, add_noise):
    if add_noise:
        noise_ref, out_ref = rest
    else:
        (out_ref,) = rest

    HW = H * W
    pad_h, pad_w = KH // 2, KW // 2

    # ---- modulation + demodulation (kept in f32) ----
    wgt = wgt_ref[...]                     # (tco, KH*KW*C_in) f32
    sty = styles_ref[0]                    # (1,   KH*KW*C_in) f32 (styles pre-tiled over taps)
    w_mod = wgt * sty
    d = jax.lax.rsqrt(jnp.sum(w_mod * w_mod, axis=1, keepdims=True) + 1e-8)  # (tco, 1)
    w2 = (w_mod * d).astype(jnp.bfloat16)  # (tco, K_all) bf16 for the MXU

    # ---- im2col by shift-and-mask on the flattened (lane-dense) image ----
    x_flat = x_ref[0]                      # (C_in, H*W) bf16
    pos = jax.lax.broadcasted_iota(jnp.int32, (1, HW), 1)
    if W & (W - 1) == 0:
        jj = jnp.bitwise_and(pos, W - 1)   # column index (W is a power of two)
    else:
        jj = pos % W                       # TODO(synk): verify int-mod lowering for non-pow2 W

    taps = []
    for dy in range(KH):
        oy = dy - pad_h
        for dx in range(KW):
            ox = dx - pad_w
            s = oy * W + ox                # flat shift of this tap
            t = x_flat if s == 0 else jnp.roll(x_flat, -s, axis=1)
            # zero out positions whose true (row, col) source falls outside the image
            conds = []
            if oy > 0:
                conds.append(pos < (H - oy) * W)
            if oy < 0:
                conds.append(pos >= (-oy) * W)
            if ox > 0:
                conds.append(jj < W - ox)
            if ox < 0:
                conds.append(jj >= -ox)
            if conds:
                valid = conds[0]
                for cnd in conds[1:]:
                    valid = jnp.logical_and(valid, cnd)
                t = jnp.where(valid, t, jnp.zeros_like(t))
            taps.append(t)
    patch = jnp.concatenate(taps, axis=0)  # (KH*KW*C_in, H*W) bf16

    # ---- single lane-dense MXU matmul: (tco, K) @ (K, H*W) -> (tco, H*W) f32 ----
    y = jnp.dot(w2, patch, preferred_element_type=jnp.float32)

    if add_noise:
        y = y + noise_ref[...]             # (1, H*W) broadcast over output channels
    # leaky_relu(0.2) with act_gain folded into the select
    y = jnp.where(y >= 0.0, y * act_gain, y * (0.2 * act_gain))
    out_ref[0] = y.astype(out_ref.dtype)


def synthesis_layer_forward(x_nchw, w_lat, params, *, kernel_size=3,
                            noise_mode='none', gain=1.0):
    """x_nchw: [B, C_in, H, W]  (PyTorch layout);  w_lat: [B, w_dim]."""
    assert noise_mode in ('none', 'const')
    assert kernel_size % 2 == 1, "even kernel_size would diverge from SAME padding"
    B, C_in, H, W = map(int, x_nchw.shape)
    w_dim = int(w_lat.shape[1])
    conv_w = params['weight']                           # (C_out, C_in, KH, KW)
    C_out, _, KH, KW = map(int, conv_w.shape)
    assert KH == kernel_size and KW == kernel_size
    act_gain = float(np.sqrt(2.0)) * float(gain)        # lrelu def_gain * gain
    HW = H * W
    K_all = KH * KW * C_in
    add_noise = (noise_mode == 'const')

    # -- affine hoisted out of the kernel: one batched (B,w_dim)x(w_dim,C_in) matmul --
    aff_w = params['aff_weight'].astype(jnp.float32)    # (C_in, w_dim)
    styles = (w_lat.astype(jnp.float32)
              @ (aff_w.T * (1.0 / math.sqrt(w_dim)))
              + params['aff_bias'].astype(jnp.float32)[None, :])        # (B, C_in)
    # pre-tile over the KH*KW taps so in-kernel modulation is a plain 2-D multiply
    styles_tiled = jnp.tile(styles, (1, KH * KW)).reshape(B, 1, K_all)  # col = tap*C_in + c

    # -- weight as (C_out, KH*KW*C_in) with col = (dy*KW+dx)*C_in + c (f32 for demod) --
    wgt2d = jnp.transpose(conv_w, (0, 2, 3, 1)).reshape(C_out, K_all).astype(jnp.float32)

    # -- activations flattened (spatial on the lane axis), bf16 for DMA + MXU --
    x_flat = x_nchw.reshape(B, C_in, HW).astype(jnp.bfloat16)

    # -- C_out tiling: bounds VMEM (v7x 64 MiB) and gives a 2nd parallel grid axis --
    if C_out > 256 and C_out % 256 == 0:
        tco = 256
    elif C_out > 128 and C_out % 128 == 0:
        tco = 128
    else:
        tco = C_out
    n_co = C_out // tco

    in_specs = [
        pl.BlockSpec((1, 1, K_all), lambda b, j: (b, 0, 0)),   # tiled styles
        pl.BlockSpec((tco, K_all), lambda b, j: (j, 0)),       # conv weight tile
        pl.BlockSpec((1, C_in, HW), lambda b, j: (b, 0, 0)),   # flattened input
    ]
    inputs = [styles_tiled, wgt2d, x_flat]
    if add_noise:
        noise_plane = (params['noise_const'].astype(jnp.float32)
                       * params['noise_strength']).reshape(1, HW)
        in_specs.append(pl.BlockSpec((1, HW), lambda b, j: (0, 0)))
        inputs.append(noise_plane)

    # Raise the scoped VMEM limit only for big resident blocks (v5e/v6e defaults 16/32 MiB).
    blk_bytes = 2 * (tco * K_all * 4 + C_in * HW * 2 + K_all * 4 + tco * HW * 4)
    cp_kwargs = dict(dimension_semantics=("parallel", "parallel"))
    if blk_bytes > 8 * 1024 * 1024:
        cp_kwargs["vmem_limit_bytes"] = min(int(4 * blk_bytes), 100 * 1024 * 1024)

    kernel = functools.partial(_synthesis_kernel, H=H, W=W, KH=KH, KW=KW,
                               act_gain=act_gain, add_noise=add_noise)

    out = pl.pallas_call(
        kernel,
        out_shape=jax.ShapeDtypeStruct((B, C_out, HW), x_nchw.dtype),
        grid=(B, n_co),
        in_specs=in_specs,
        out_specs=pl.BlockSpec((1, tco, HW), lambda b, j: (b, j, 0)),   # lane-dense output
        compiler_params=pltpu.CompilerParams(**cp_kwargs),
    )(*inputs)

    return out.reshape(B, C_out, H, W)                  # already NCHW


def _reference_forward(x_nchw, w_lat, params, *, noise_mode='none', gain=1.0):
    """Pure-JAX reference mirroring the PyTorch forward (for verification)."""
    B, C_in, H, W = x_nchw.shape
    w_dim = w_lat.shape[1]
    conv_w = params['weight']
    act_gain = float(np.sqrt(2.0)) * float(gain)
    styles = w_lat @ (params['aff_weight'] * (1.0 / math.sqrt(w_dim))).T \
        + params['aff_bias'][None, :]
    wm = conv_w[None] * styles[:, None, :, None, None]
    d = jax.lax.rsqrt(jnp.sum(wm * wm, axis=(2, 3, 4)) + 1e-8)
    wm = wm * d[:, :, None, None, None]
    outs = []
    for b in range(B):
        outs.append(jax.lax.conv_general_dilated(
            x_nchw[b:b + 1], wm[b], window_strides=(1, 1), padding='SAME',
            dimension_numbers=('NCHW', 'OIHW', 'NCHW')))
    y = jnp.concatenate(outs, axis=0)
    if noise_mode == 'const':
        y = y + (params['noise_const'] * params['noise_strength'])[None, None, :, :]
    y = jnp.where(y >= 0, y, 0.2 * y) * act_gain
    return y


if __name__ == "__main__":
    # Small shapes consistent with the module.
    B, C_in, C_out, w_dim, resolution, ksize = 2, 4, 8, 32, 16, 3

    key = jax.random.PRNGKey(0)
    k_x, k_w, k_aff, k_conv, k_noise = jax.random.split(key, 5)

    x = jax.random.normal(k_x, (B, C_in, resolution, resolution), jnp.float32)
    w_lat = jax.random.normal(k_w, (B, w_dim), jnp.float32)

    params = {
        # FullyConnectedLayer(w_dim, in_channels, bias_init=1)
        'aff_weight': jax.random.normal(k_aff, (C_in, w_dim), jnp.float32),
        'aff_bias': jnp.ones((C_in,), jnp.float32),
        # conv weight torch.randn([out, in, k, k])
        'weight': jax.random.normal(k_conv, (C_out, C_in, ksize, ksize), jnp.float32),
        # noise buffers (only used under noise_mode='const')
        'noise_const': jax.random.normal(k_noise, (resolution, resolution), jnp.float32),
        'noise_strength': jnp.asarray(0.7, jnp.float32),
    }

    for mode in ('none', 'const'):
        out = synthesis_layer_forward(x, w_lat, params, kernel_size=ksize,
                                      noise_mode=mode, gain=1.0)
        out = jax.block_until_ready(out)
        ref = _reference_forward(x, w_lat, params, noise_mode=mode, gain=1.0)
        ref = jax.block_until_ready(ref)
        assert out.shape == (B, C_out, resolution, resolution), out.shape
        # bf16 MXU operands with f32 accumulation / f32 demodulation -> loosened tolerance
        np.testing.assert_allclose(np.asarray(out), np.asarray(ref), rtol=2e-2, atol=3e-2)

    print("KERNEL_OK")
</pallas_src>

<mosaic_0001>
module attributes {stable_mosaic.version = 11 : i64} {
  func.func @_synthesis_kernel(%arg0: i32, %arg1: i32, %arg2: memref<1x1x36xf32, #tpu.memory_space<vmem>>, %arg3: memref<8x36xf32, #tpu.memory_space<vmem>>, %arg4: memref<1x4x256xbf16, #tpu.memory_space<vmem>>, %arg5: memref<1x8x256xf32, #tpu.memory_space<vmem>>) attributes {dimension_semantics = [#tpu.dimension_semantics<parallel>, #tpu.dimension_semantics<parallel>], iteration_bounds = array<i64: 2, 1>, scalar_prefetch = 0 : i64, scratch_operands = 0 : i64, tpu.core_type = #tpu.core_type<tc>, window_params = [{transform_indices = @transform_0, window_bounds = array<i64: 1, 1, 36>}, {transform_indices = @transform_1, window_bounds = array<i64: 8, 36>}, {transform_indices = @transform_2, window_bounds = array<i64: 1, 4, 256>}, {transform_indices = @transform_3, window_bounds = array<i64: 1, 8, 256>}]} {
    %c0 = arith.constant 0 : index
    %c0_0 = arith.constant 0 : index
    %0 = vector.load %arg3[%c0, %c0_0] : memref<8x36xf32, #tpu.memory_space<vmem>>, vector<8x36xf32>
    %c0_1 = arith.constant 0 : index
    %c0_2 = arith.constant 0 : index
    %c0_3 = arith.constant 0 : index
    %1 = vector.load %arg2[%c0_1, %c0_2, %c0_3] : memref<1x1x36xf32, #tpu.memory_space<vmem>>, vector<1x1x36xf32>
    %2 = vector.shape_cast %1 : vector<1x1x36xf32> to vector<1x36xf32>
    %3 = vector.broadcast %2 : vector<1x36xf32> to vector<8x36xf32>
    %4 = arith.mulf %0, %3 : vector<8x36xf32>
    %5 = arith.mulf %4, %4 : vector<8x36xf32>
    %cst = arith.constant dense<0.000000e+00> : vector<8xf32>
    %6 = vector.multi_reduction <add>, %5, %cst [1] : vector<8x36xf32> to vector<8xf32>
    %7 = vector.shape_cast %6 : vector<8xf32> to vector<8x1xf32>
    %cst_4 = arith.constant 9.99999993E-9 : f32
    %8 = vector.broadcast %cst_4 : f32 to vector<8x1xf32>
    %9 = arith.addf %7, %8 : vector<8x1xf32>
    %10 = math.rsqrt %9 : vector<8x1xf32>
    %11 = vector.broadcast %10 : vector<8x1xf32> to vector<8x36xf32>
    %12 = arith.mulf %4, %11 : vector<8x36xf32>
    %13 = arith.truncf %12 : vector<8x36xf32> to vector<8x36xbf16>
    %c0_5 = arith.constant 0 : index
    %c0_6 = arith.constant 0 : index
    %c0_7 = arith.constant 0 : index
    %14 = vector.load %arg4[%c0_5, %c0_6, %c0_7] : memref<1x4x256xbf16, #tpu.memory_space<vmem>>, vector<1x4x256xbf16>
    %15 = vector.shape_cast %14 : vector<1x4x256xbf16> to vector<4x256xbf16>
    %16 = tpu.iota {dimensions = array<i32: 1>} : vector<1x256xi32>
    %c15_i32 = arith.constant 15 : i32
    %17 = vector.broadcast %c15_i32 : i32 to vector<1x256xi32>
    %18 = arith.andi %16, %17 : vector<1x256xi32>
    %19 = vector.extract_strided_slice %15 {offsets = [0, 239], sizes = [4, 17], strides = [1, 1]} : vector<4x256xbf16> to vector<4x17xbf16>
    %20 = vector.extract_strided_slice %15 {offsets = [0, 0], sizes = [4, 239], strides = [1, 1]} : vector<4x256xbf16> to vector<4x239xbf16>
    %21 = tpu.concatenate %19, %20 in 1 : vector<4x17xbf16>, vector<4x239xbf16> -> vector<4x256xbf16>
    %c16_i32 = arith.constant 16 : i32
    %22 = vector.broadcast %c16_i32 : i32 to vector<1x256xi32>
    %23 = arith.cmpi sge, %16, %22 : vector<1x256xi32>
    %c1_i32 = arith.constant 1 : i32
    %24 = vector.broadcast %c1_i32 : i32 to vector<1x256xi32>
    %25 = arith.cmpi sge, %18, %24 : vector<1x256xi32>
    %26 = arith.andi %23, %25 : vector<1x256xi1>
    %cst_8 = arith.constant 0.000000e+00 : bf16
    %27 = vector.broadcast %cst_8 : bf16 to vector<4x256xbf16>
    %28 = vector.shape_cast %26 : vector<1x256xi1> to vector<1x256xi1>
    %29 = vector.broadcast %28 : vector<1x256xi1> to vector<4x256xi1>
    %30 = arith.select %29, %21, %27 : vector<4x256xi1>, vector<4x256xbf16>
    %31 = vector.extract_strided_slice %15 {offsets = [0, 240], sizes = [4, 16], strides = [1, 1]} : vector<4x256xbf16> to vector<4x16xbf16>
    %32 = vector.extract_strided_slice %15 {offsets = [0, 0], sizes = [4, 240], strides = [1, 1]} : vector<4x256xbf16> to vector<4x240xbf16>
    %33 = tpu.concatenate %31, %32 in 1 : vector<4x16xbf16>, vector<4x240xbf16> -> vector<4x256xbf16>
    %c16_i32_9 = arith.constant 16 : i32
    %34 = vector.broadcast %c16_i32_9 : i32 to vector<1x256xi32>
    %35 = arith.cmpi sge, %16, %34 : vector<1x256xi32>
    %cst_10 = arith.constant 0.000000e+00 : bf16
    %36 = vector.broadcast %cst_10 : bf16 to vector<4x256xbf16>
    %37 = vector.shape_cast %35 : vector<1x256xi1> to vector<1x256xi1>
    %38 = vector.broadcast %37 : vector<1x256xi1> to vector<4x256xi1>
    %39 = arith.select %38, %33, %36 : vector<4x256xi1>, vector<4x256xbf16>
    %40 = vector.extract_strided_slice %15 {offsets = [0, 241], sizes = [4, 15], strides = [1, 1]} : vector<4x256xbf16> to vector<4x15xbf16>
    %41 = vector.extract_strided_slice %15 {offsets = [0, 0], sizes = [4, 241], strides = [1, 1]} : vector<4x256xbf16> to vector<4x241xbf16>
    %42 = tpu.concatenate %40, %41 in 1 : vector<4x15xbf16>, vector<4x241xbf16> -> vector<4x256xbf16>
    %c16_i32_11 = arith.constant 16 : i32
    %43 = vector.broadcast %c16_i32_11 : i32 to vector<1x256xi32>
    %44 = arith.cmpi sge, %16, %43 : vector<1x256xi32>
    %c15_i32_12 = arith.constant 15 : i32
    %45 = vector.broadcast %c15_i32_12 : i32 to vector<1x256xi32>
    %46 = arith.cmpi slt, %18, %45 : vector<1x256xi32>
    %47 = arith.andi %44, %46 : vector<1x256xi1>
    %cst_13 = arith.constant 0.000000e+00 : bf16
    %48 = vector.broadcast %cst_13 : bf16 to vector<4x256xbf16>
    %49 = vector.shape_cast %47 : vector<1x256xi1> to vector<1x256xi1>
    %50 = vector.broadcast %49 : vector<1x256xi1> to vector<4x256xi1>
    %51 = arith.select %50, %42, %48 : vector<4x256xi1>, vector<4x256xbf16>
    %52 = vector.extract_strided_slice %15 {offsets = [0, 255], sizes = [4, 1], strides = [1, 1]} : vector<4x256xbf16> to vector<4x1xbf16>
    %53 = vector.extract_strided_slice %15 {offsets = [0, 0], sizes = [4, 255], strides = [1, 1]} : vector<4x256xbf16> to vector<4x255xbf16>
    %54 = tpu.concatenate %52, %53 in 1 : vector<4x1xbf16>, vector<4x255xbf16> -> vector<4x256xbf16>
    %c1_i32_14 = arith.constant 1 : i32
    %55 = vector.broadcast %c1_i32_14 : i32 to vector<1x256xi32>
    %56 = arith.cmpi sge, %18, %55 : vector<1x256xi32>
    %cst_15 = arith.constant 0.000000e+00 : bf16
    %57 = vector.broadcast %cst_15 : bf16 to vector<4x256xbf16>
    %58 = vector.shape_cast %56 : vector<1x256xi1> to vector<1x256xi1>
    %59 = vector.broadcast %58 : vector<1x256xi1> to vector<4x256xi1>
    %60 = arith.select %59, %54, %57 : vector<4x256xi1>, vector<4x256xbf16>
    %61 = vector.extract_strided_slice %15 {offsets = [0, 1], sizes = [4, 255], strides = [1, 1]} : vector<4x256xbf16> to vector<4x255xbf16>
    %62 = vector.extract_strided_slice %15 {offsets = [0, 0], sizes = [4, 1], strides = [1, 1]} : vector<4x256xbf16> to vector<4x1xbf16>
    %63 = tpu.concatenate %61, %62 in 1 : vector<4x255xbf16>, vector<4x1xbf16> -> vector<4x256xbf16>
    %c15_i32_16 = arith.constant 15 : i32
    %64 = vector.broadcast %c15_i32_16 : i32 to vector<1x256xi32>
    %65 = arith.cmpi slt, %18, %64 : vector<1x256xi32>
    %cst_17 = arith.constant 0.000000e+00 : bf16
    %66 = vector.broadcast %cst_17 : bf16 to vector<4x256xbf16>
    %67 = vector.shape_cast %65 : vector<1x256xi1> to vector<1x256xi1>
    %68 = vector.broadcast %67 : vector<1x256xi1> to vector<4x256xi1>
    %69 = arith.select %68, %63, %66 : vector<4x256xi1>, vector<4x256xbf16>
    %70 = vector.extract_strided_slice %15 {offsets = [0, 15], sizes = [4, 241], strides = [1, 1]} : vector<4x256xbf16> to vector<4x241xbf16>
    %71 = vector.extract_strided_slice %15 {offsets = [0, 0], sizes = [4, 15], strides = [1, 1]} : vector<4x256xbf16> to vector<4x15xbf16>
    %72 = tpu.concatenate %70, %71 in 1 : vector<4x241xbf16>, vector<4x15xbf16> -> vector<4x256xbf16>
    %c240_i32 = arith.constant 240 : i32
    %73 = vector.broadcast %c240_i32 : i32 to vector<1x256xi32>
    %74 = arith.cmpi slt, %16, %73 : vector<1x256xi32>
    %c1_i32_18 = arith.constant 1 : i32
    %75 = vector.broadcast %c1_i32_18 : i32 to vector<1x256xi32>
    %76 = arith.cmpi sge, %18, %75 : vector<1x256xi32>
    %77 = arith.andi %74, %76 : vector<1x256xi1>
    %cst_19 = arith.constant 0.000000e+00 : bf16
    %78 = vector.broadcast %cst_19 : bf16 to vector<4x256xbf16>
    %79 = vector.shape_cast %77 : vector<1x256xi1> to vector<1x256xi1>
    %80 = vector.broadcast %79 : vector<1x256xi1> to vector<4x256xi1>
    %81 = arith.select %80, %72, %78 : vector<4x256xi1>, vector<4x256xbf16>
    %82 = vector.extract_strided_slice %15 {offsets = [0, 16], sizes = [4, 240], strides = [1, 1]} : vector<4x256xbf16> to vector<4x240xbf16>
    %83 = vector.extract_strided_slice %15 {offsets = [0, 0], sizes = [4, 16], strides = [1, 1]} : vector<4x256xbf16> to vector<4x16xbf16>
    %84 = tpu.concatenate %82, %83 in 1 : vector<4x240xbf16>, vector<4x16xbf16> -> vector<4x256xbf16>
    %c240_i32_20 = arith.constant 240 : i32
    %85 = vector.broadcast %c240_i32_20 : i32 to vector<1x256xi32>
    %86 = arith.cmpi slt, %16, %85 : vector<1x256xi32>
    %cst_21 = arith.constant 0.000000e+00 : bf16
    %87 = vector.broadcast %cst_21 : bf16 to vector<4x256xbf16>
    %88 = vector.shape_cast %86 : vector<1x256xi1> to vector<1x256xi1>
    %89 = vector.broadcast %88 : vector<1x256xi1> to vector<4x256xi1>
    %90 = arith.select %89, %84, %87 : vector<4x256xi1>, vector<4x256xbf16>
    %91 = vector.extract_strided_slice %15 {offsets = [0, 17], sizes = [4, 239], strides = [1, 1]} : vector<4x256xbf16> to vector<4x239xbf16>
    %92 = vector.extract_strided_slice %15 {offsets = [0, 0], sizes = [4, 17], strides = [1, 1]} : vector<4x256xbf16> to vector<4x17xbf16>
    %93 = tpu.concatenate %91, %92 in 1 : vector<4x239xbf16>, vector<4x17xbf16> -> vector<4x256xbf16>
    %c240_i32_22 = arith.constant 240 : i32
    %94 = vector.broadcast %c240_i32_22 : i32 to vector<1x256xi32>
    %95 = arith.cmpi slt, %16, %94 : vector<1x256xi32>
    %c15_i32_23 = arith.constant 15 : i32
    %96 = vector.broadcast %c15_i32_23 : i32 to vector<1x256xi32>
    %97 = arith.cmpi slt, %18, %96 : vector<1x256xi32>
    %98 = arith.andi %95, %97 : vector<1x256xi1>
    %cst_24 = arith.constant 0.000000e+00 : bf16
    %99 = vector.broadcast %cst_24 : bf16 to vector<4x256xbf16>
    %100 = vector.shape_cast %98 : vector<1x256xi1> to vector<1x256xi1>
    %101 = vector.broadcast %100 : vector<1x256xi1> to vector<4x256xi1>
    %102 = arith.select %101, %93, %99 : vector<4x256xi1>, vector<4x256xbf16>
    %103 = tpu.concatenate %30, %39, %51, %60, %15, %69, %81, %90, %102 in 0 : vector<4x256xbf16>, vector<4x256xbf16>, vector<4x256xbf16>, vector<4x256xbf16>, vector<4x256xbf16>, vector<4x256xbf16>, vector<4x256xbf16>, vector<4x256xbf16>, vector<4x256xbf16> -> vector<36x256xbf16>
    %cst_25 = arith.constant dense<0.000000e+00> : vector<8x256xf32>
    %104 = tpu.matmul %13, %103, %cst_25 {dimension_numbers = #tpu.dot_dimension_numbers<[1], [0], [0], [1], [0, 0, 1, 1], [], []>} : vector<8x36xbf16>, vector<36x256xbf16>, vector<8x256xf32> -> vector<8x256xf32>
    %cst_26 = arith.constant 0.000000e+00 : f32
    %105 = vector.broadcast %cst_26 : f32 to vector<8x256xf32>
    %106 = arith.cmpf oge, %104, %105 : vector<8x256xf32>
    %cst_27 = arith.constant 1.41421354 : f32
    %107 = vector.broadcast %cst_27 : f32 to vector<8x256xf32>
    %108 = arith.mulf %104, %107 : vector<8x256xf32>
    %cst_28 = arith.constant 0.282842726 : f32
    %109 = vector.broadcast %cst_28 : f32 to vector<8x256xf32>
    %110 = arith.mulf %104, %109 : vector<8x256xf32>
    %111 = arith.select %106, %108, %110 : vector<8x256xi1>, vector<8x256xf32>
    %c0_29 = arith.constant 0 : index
    %c0_30 = arith.constant 0 : index
    %c0_31 = arith.constant 0 : index
    %112 = vector.load %arg5[%c0_29, %c0_30, %c0_31] : memref<1x8x256xf32, #tpu.memory_space<vmem>>, vector<1x8x256xf32>
    %113 = vector.shape_cast %112 : vector<1x8x256xf32> to vector<8x256xf32>
    %114 = vector.shape_cast %111 : vector<8x256xf32> to vector<1x8x256xf32>
    tpu.vector_store %arg5[%c0_29, %c0_30, %c0_31], %114 {strides = array<i32>} : memref<1x8x256xf32, #tpu.memory_space<vmem>>, vector<1x8x256xf32>,
    return
  }
  func.func @transform_0(%arg0: i32, %arg1: i32) -> (i32, i32, i32) {
    %c0_i32 = arith.constant 0 : i32
    %c0_i32_0 = arith.constant 0 : i32
    %c0_i32_1 = arith.constant 0 : i32
    return %arg0, %c0_i32, %c0_i32_0 : i32, i32, i32
  }
  func.func @transform_1(%arg0: i32, %arg1: i32) -> (i32, i32) {
    %c0_i32 = arith.constant 0 : i32
    %c0_i32_0 = arith.constant 0 : i32
    return %arg1, %c0_i32 : i32, i32
  }
  func.func @transform_2(%arg0: i32, %arg1: i32) -> (i32, i32, i32) {
    %c0_i32 = arith.constant 0 : i32
    %c0_i32_0 = arith.constant 0 : i32
    %c0_i32_1 = arith.constant 0 : i32
    return %arg0, %c0_i32, %c0_i32_0 : i32, i32, i32
  }
  func.func @transform_3(%arg0: i32, %arg1: i32) -> (i32, i32, i32) {
    %c0_i32 = arith.constant 0 : i32
    %c0_i32_0 = arith.constant 0 : i32
    return %arg0, %arg1, %c0_i32 : i32, i32, i32
  }
}

</mosaic_0001>

<bundles_post_ra>
// kernel: tpu_custom_call.1
= control target key start
LH: loop header
LB: loop body
LE: loop exit
PB: predicated region body
PF: predicated region fallthrough
CT: control target
= control target key end

     0   :  { %s1619_s0 = inlined_call_operand.hbm [shape: f32[2,1,36], index: 0, kind: input, shape index: {}]   ;;  %s1620_s1 = inlined_call_operand.hbm [shape: f32[8,36], index: 1, kind: input, shape index: {}]   ;;  %s1621_s2 = inlined_call_operand.hbm [shape: bf16[2,4,256], index: 2, kind: input, shape index: {}]   ;;  %s1622_s3 = inlined_call_operand.hbm [shape: f32[2,8,256], index: 3, kind: output, shape index: {}]  }
   0x1   :  { %1632 = sst [smem:[#allocation13_spill]] %s1619_s0 }
   0x2   :  { %8 = vsyncpa [#allocation3], 0 }
   0x3   :  { %10 = vsyncpa [#allocation3 + $0x1], 0 }
   0x4   :  { %11 = vsyncpa [#allocation6], 0 }
   0x5   :  { %12 = vsyncpa [#allocation4], 0 }
   0x6   :  { %14 = vsyncpa [#allocation4 + $0x1], 0  ;;  %s1118_s12 = smov 0   ;;  %s1120_s13 = smov 0  }
   0x7   :  { %s1122_s14 = smov 0   ;;  %s1124_s15 = smov 0  }
   0x8   :  { %s1126_s16 = smov 0   ;;  %s1128_s17 = smov 0  }
   0x9 LB: > { %s32_s18 = sadd.s32 1, %s1078_s16  ;;  %s39_s19 = sadd.s32 1, %s1070_s14  ;;  %s1082_s17 = sphi %s1128_s17, %s20_s17   ;;  %s1078_s16 = sphi %s1126_s16, %s1716_s16   ;;  %s1074_s15 = sphi %s1124_s15, %s1715_s15   ;;  %s1070_s14 = sphi %s1122_s14, %s1714_s14   ;;  %s1066_s13 = sphi %s1120_s13, %s1713_s13   ;;  %s1062_s12 = sphi %s1118_s12, %s1712_s12  }
   0xa   : > { %p34_p0 = scmp.ge.s32.totalorder %s32_s18, 2  ;;  %p46_p1 = scmp.ne.s32.totalorder %s1070_s14, %s1066_s13 }
   0xb   : > { %p47_p2 = scmp.eq.s32.totalorder %s1082_s17, 0  ;;  %p840_p5 = scmp.lt.s32.totalorder %s1082_s17, 2 }
   0xc   : > { %s1718_s18 = smov (%p34_p0, %s32_s18), 0  ;;  %s169_s21 = sand.u32 1, %s1082_s17  }
   0xd   : > { %p48_p4 = por %p47_p2, %p46_p1  ;;  %s36_s20 = ssub.s32 %s1078_s16, %s1718_s18 }
   0xe   : > { %p37_p6 = scmp.eq.s32.totalorder %s36_s20, 0  ;;  %s171_s22 = sand.u32 1, %s1070_s14  }
   0xf   : > { %s795_s23 = sshll.u32 %s1078_s16, 4  ;;  %s1633_s0 = sld [smem:[#allocation13_spill]] }
  0x10   : > { %s1166_s24 = scalar_select %p37_p6, %s1070_s14, %s39_s19  }
  0x11   : > { %s172_s28 = scalar_lea.vmem [#allocation2], %s171_s22  ;;  %p1173_p7 = pnand %p840_p5, %p48_p4 }
  0x12   : > { %s179_s29 = sshll.u32 %s172_s28, 4  ;;  %s1179_s4 = sshll.u32 %s171_s22, 2  ;;  %s1177_s29 = int_to_ptr.vmem [resolvable:$true] %s179_s29 }
  0x13   : > { %s1181_s5 = scalar_lea.sflag [#allocation3], %s169_s21  ;;  %p906_p9 = pneg %p1173_p7 }
  0x15   : > { %s1171_s27 = scalar_lea.hbm %s1633_s0, %s795_s23  ;;  %s909_s9 = scalar_lea.hbm %s1633_s0, 32 }
  0x16   : > { %s904_s6 = scalar_lea.hbm %s1171_s27, 16  ;;  %p910_p12 = scmp.lt.u32.totalorder %s1171_s27, %s1633_s0 }
  0x17   : > { %p905_p8 = scmp.ne.s32.totalorder %s1171_s27, %s904_s6  ;;  %p911_p13 = scmp.lt.u32.totalorder %s909_s9, %s904_s6 }
  0x18   : > { %p913_p2 = scmp.lt.u32.totalorder %s904_s6, %s1171_s27 }
  0x19   : > { %p907_p10 = pnand %p906_p9, %p905_p8  ;;  %p912_p0 = por %p911_p13, %p910_p12 }
  0x1b   : > { %p908_p11 = pneg %p907_p10  ;;  %p914_p4 = por %p913_p2, %p912_p0 }
  0x1d   : > { %p915_p5 = pnand %p914_p4, %p908_p11 }
  0x1f   : > { %918 = shalt.err (!%p915_p5)
}
  0x20   : > { %s919_s19 = scalar_lea.vmem %s1177_s29, 16  ;;  %s1084_s20 = smov [#allocation2]  }
  0x21   : > { %p920_p6 = scmp.ne.s32.totalorder %s1177_s29, %s919_s19  ;;  %s924_s21 = sshll.u32 %s1084_s20, 4  ;;  %s925_s21 = int_to_ptr.vmem [resolvable:$false] %s924_s21 }
  0x22   : > { %s926_s22 = scalar_lea.vmem %s925_s21, 32  ;;  %p927_p3 = scmp.lt.s32.totalorder %s1177_s29, %s925_s21 }
  0x23   : > { %p922_p8 = pnand %p920_p6, %p906_p9  ;;  %p928_p12 = scmp.lt.s32.totalorder %s926_s22, %s919_s19 }
  0x25   : > { %p923_p10 = pneg %p922_p8  ;;  %p929_p13 = por %p928_p12, %p927_p3 }
  0x27   : > { %p930_p0 = pnand %p929_p13, %p923_p10 }
  0x29   : > { %933 = shalt.err (!%p930_p0)
}
  0x2a   : > { %831 = dma.hbm_to_vmem [thread:$0]  (!%p1173_p7), %s1171_s27, 16, %s1177_s29, %s1181_s5  }
  0x2b   : > { %s1210_s23 = sadd.s32 4294967295, %s1082_s17   ;;  %s791_s25 = sadd.s32 4294967294, %s1082_s17  }
  0x2c   : > { %p52_p3 = scmp.ne.s32.totalorder %s1066_s13, %s1062_s12  ;;  %p1623_p11 = scmp.eq.s32.totalorder %s1210_s23, 0 }
  0x2d   : > { %p130_p2 = scmp.eq.s32.totalorder %s1210_s23, 1  ;;  %p136_p4 = scmp.eq.s32.totalorder %s791_s25, 1 }
  0x2e   : > { %p792_p5 = scmp.ge.s32.totalorder %s1082_s17, 1  ;;  %p1220_p6 = por %p1623_p11, %p52_p3 }
  0x2f   : > { %p1227_p8 = por %p130_p2, %p46_p1  ;;  %p1231_p10 = por %p136_p4, %p52_p3 }
  0x30   : > { %s1635_s26 = scalar_select %p1220_p6, 1, 0 }
  0x31   : > { %s1636_s27 = scalar_select %p1227_p8, 1, 0 }
  0x32   : > { %s1637_s28 = scalar_select %p1231_p10, 1, 0 }
  0x33   : > { %p143_p12 = scmp.lt.s32.totalorder %s1082_s17, 3  ;;  %s1085_s6 = smov [#allocation5]  }
  0x34   : > { %s158_s7 = sshll.u32 %s1085_s6, 4  ;;  %s812_s8 = sshll.u32 %s1078_s16, 6  ;;  %s1240_s7 = int_to_ptr.vmem [resolvable:$true] %s158_s7 }
  0x35   : > { %p1236_p13 = pnand %p792_p5, %p143_p12  ;;  %s1248_s11 = scalar_lea.hbm %s1621_s2, %s812_s8 }
  0x36   : > { %s190_s19 = scalar_lea.vmem [#allocation7], %s1179_s4  ;;  %s934_s22 = scalar_lea.hbm %s1248_s11, 64 }
  0x37   : > { %s1638_s29 = scalar_select %p1236_p13, 1, 0 }
  0x38   : > { %p824_p1 = pneg %p1236_p13  ;;  %s198_s20 = sshll.u32 %s190_s19, 4  ;;  %s199_s20 = int_to_ptr.vmem [resolvable:$true] %s198_s20 }
  0x39   : > { %p935_p3 = scmp.ne.s32.totalorder %s1248_s11, %s934_s22  ;;  %s939_s8 = scalar_lea.hbm %s1621_s2, 128 }
  0x3a   : > { %p1253_p0 = pnand %p824_p1, %p1623_p11  ;;  %p940_p5 = scmp.lt.u32.totalorder %s1248_s11, %s1621_s2 }
  0x3b   : > { %p937_p2 = pnand %p935_p3, %p906_p9  ;;  %p941_p12 = scmp.lt.u32.totalorder %s939_s8, %s934_s22 }
  0x3c   : > { %s1639_s21 = scalar_select %p1253_p0, 1, 0 }
  0x3d   : > { %p938_p4 = pneg %p937_p2  ;;  %p942_p1 = por %p941_p12, %p940_p5 }
  0x3e   : > { %p943_p11 = scmp.lt.u32.totalorder %s934_s22, %s1248_s11 }
  0x40   : > { %p944_p10 = por %p943_p11, %p942_p1 }
  0x42   : > { %p945_p8 = pnand %p944_p10, %p938_p4 }
  0x44   : > { %948 = shalt.err (!%p945_p8)
}
  0x45   : > { %s949_s4 = scalar_lea.vmem %s199_s20, 64  ;;  %s1086_s19 = smov [#allocation7]  }
  0x46   : > { %p950_p6 = scmp.ne.s32.totalorder %s199_s20, %s949_s4  ;;  %s954_s25 = sshll.u32 %s1086_s19, 4  ;;  %s955_s25 = int_to_ptr.vmem [resolvable:$false] %s954_s25 }
  0x47   : > { %s956_s6 = scalar_lea.vmem %s955_s25, 128  ;;  %p957_p13 = scmp.lt.s32.totalorder %s199_s20, %s955_s25 }
  0x48   : > { %p952_p3 = pnand %p950_p6, %p906_p9  ;;  %p958_p0 = scmp.lt.s32.totalorder %s956_s6, %s949_s4 }
  0x4a   : > { %p953_p2 = pneg %p952_p3  ;;  %p959_p5 = por %p958_p0, %p957_p13 }
  0x4c   : > { %p960_p12 = pnand %p959_p5, %p953_p2 }
  0x4e   : > { %963 = shalt.err (!%p960_p12)
}
  0x4f   : > { %834 = dma.hbm_to_vmem [thread:$0]  (!%p1173_p7), %s1248_s11, 64, %s199_s20, %s1181_s5  }
  0x50   : > { %s964_s9 = scalar_lea.hbm %s1620_s1, 128  ;;  %p1640_p11 = scmp.ne.s32.totalorder %s1639_s21, 0 }
  0x51   : > { %p965_p9 = scmp.ne.s32.totalorder %s1620_s1, %s964_s9  ;;  %p971_p13 = scmp.lt.u32.totalorder %s964_s9, %s1620_s1 }
  0x52   : > { %p966_p6 = pneg %p1640_p11 }
  0x54   : > { %p967_p8 = pnand %p966_p6, %p965_p9 }
  0x56   : > { %p968_p10 = pneg %p967_p8 }
  0x58   : > { %p973_p0 = pnand %p971_p13, %p968_p10 }
  0x5a   : > { %976 = shalt.err (!%p973_p0)
}
  0x5b   : > { %s977_s30 = scalar_lea.vmem %s1240_s7, 128  ;;  %p985_p3 = scmp.lt.s32.totalorder %s1240_s7, %s1240_s7 }
  0x5c   : > { %p978_p7 = scmp.ne.s32.totalorder %s1240_s7, %s977_s30  ;;  %p986_p2 = scmp.lt.s32.totalorder %s977_s30, %s977_s30 }
  0x5e   : > { %p980_p4 = pnand %p978_p7, %p966_p6  ;;  %p987_p5 = por %p986_p2, %p985_p3 }
  0x60   : > { %p981_p1 = pneg %p980_p4 }
  0x62   : > { %p988_p12 = pnand %p987_p5, %p981_p1 }
  0x64   : > { %991 = shalt.err (!%p988_p12)
}
  0x65   : > { %827 = dma.hbm_to_vmem [thread:$0]  (!%p1640_p11), %s1620_s1, 128, %s1240_s7, [#allocation6]  }
  0x66   : > { %p1641_p9 = scmp.ne.s32.totalorder %s1638_s29, 0 }
  0x67   : > { %s209_s11 = sand.u32 (!%p1641_p9), 1, %s1210_s23   ;;  %s1302_s20 = sand.u32 (!%p1641_p9), 1, %s1066_s13  }
  0x68   : > { %207 = sbr.rel (%p1641_p9) target bundleno = 525 (0x20d), region = 32  ;;  %s210_s25 = scalar_lea.sflag (!%p1641_p9), [#allocation3], %s209_s11 }
  0x69   : > { %s212_s6 = scalar_lea.vmem (!%p1641_p9), [#allocation2], %s1302_s20  ;;  %p1642_p6 = scmp.ne.s32.totalorder (!%p1641_p9), %s1635_s26, 0 }
  0x6f   : > { %1045 = dma.done.wait (%p1642_p6), %s210_s25, 16  }
  0x70   : > { %1047 = vsyncadd (%p1642_p6), %s210_s25, 4294967280  ;;  %p1643_p8 = scmp.eq.s32.totalorder %s1210_s23, 0 }
  0x72   : > { %1049 = dma.done.wait (%p1643_p8), [#allocation6], 128   ;;  %p1644_p11 = pmov %p1643_p8 }
  0x73   : > { %s801_s29 = sshll.u32 %s1302_s20, 2 }
  0x74   : > { %1051 = vsyncadd (%p1644_p11), [#allocation6], 4294967168  ;;  %s225_s7 = scalar_lea.vmem [#allocation7], %s801_s29 }
  0x75   : > { %1053 = dma.done.wait (%p1642_p6), %s210_s25, 64  }
  0x76   : > { %1055 = vsyncadd (%p1642_p6), %s210_s25, 4294967232  ;;  %v1087_v0 = vmov 0   ;;  %v255_v1 = vld [vmem:[#allocation5] sm:$0xff]  ;;  %v803_v2 = vld [vmem:[%s212_s6] ss:$0 sm:$0xff]  ;;  %vm1628_vm0 = vcmask 293888   ;;  %v274_v8 = vlaneseq }
  0x77   : > { %644 = vmatprep.mubr.bf16.mxu0 %v1087_v0  ;;  %v1319_v3 = vmul.f32 %v803_v2, %v255_v1  ;;  %v1321_v4 = vld.sshfl [vmem:[%s225_s7] sm:$0x33 pattern:$0x76325410]  ;;  %s1088_s23 = smov 16   ;;  %s1089_s26 = smov 15  }
  0x78   : > { %326 = vrot.lane.b32.xlu1 %v1321_v4, %s1088_s23  ;;  %v1326_v5 = vcombine.high %v1321_v4, %v1321_v4  ;;  %s1090_s21 = smov 17   ;;  %s1091_s22 = smov 1   ;;  %v275_v10 = vand.u32 127, %v274_v8  ;;  %v1645_v16 = vmov 0  ;;  %v313_v21 = vshrl.u32 %v274_v8, 7 }
  0x79   : > { %v264_v6 = vmul.f32 %v1319_v3, %v1319_v3  ;;  %s1092_s8 = smov 127   ;;  %s1093_s9 = smov 113   ;;  %vm1630_vm12 = vmmov 1   ;;  %v1659_v44 = vmov 0  ;;  %v1661_v45 = vmov 0 }
  0x7a   : > { %s1094_s10 = smov 112   ;;  %s1095_s4 = smov 111   ;;  %v1348_v12 = vadd.s32 128, %v275_v10  ;;  %v277_v13 = vand.u32 15, %v275_v10  ;;  %vm300_vm1 = vcmp.ge.s32.totalorder %v275_v10, 16  ;;  %v1384_v23 = vsub.s32 0, %v313_v21 }
  0x7b   : > { %v266_v7 = vsel %vm1628_vm0, %v264_v6, 0.0  ;;  %v1386_v24 = vsub.s32 4, %v313_v21  ;;  %vm340_vm13 = vmpackc.low %vm1630_vm12, %vm300_vm1  ;;  %v1671_v57 = vmov 0  ;;  %s802_s19 = sshll.u32 %s1302_s20, 4  ;;  %s813_s30 = sshll.u32 %s1074_s15, 8 }
  0x7c   : > { %267 = vadd.xlane.f32.xlu0 %v266_v7  ;;  %354 = vrot.lane.b32.xlu1 %v1326_v5, %s1089_s26  ;;  %v278_v15 = vand.u32 15, %v1348_v12  ;;  %vm1351_vm2 = vcmp.lt.s32.totalorder %v277_v13, 15  ;;  %vm1357_vm3 = vcmp.ge.s32.totalorder %v277_v13, 1  ;;  %vm1629_vm10 = vcmp.lt.s32.totalorder %v1348_v12, 240  ;;  %s251_s0 = scalar_lea.vmem [#allocation8], %s802_s19  ;;  %s1570_s6 = scalar_lea.hbm %s1622_s3, %s813_s30 }
  0x7d   : > { %v1646_v16 = vsel %vm1351_vm2, 4294967295, %v1645_v16  ;;  %vm368_vm5 = vmand %vm300_vm1, %vm1351_vm2  ;;  %v341_v32 = vsel %vm340_vm13, 65537, %v1087_v0  ;;  %s680_s5 = sshll.u32 %s251_s0, 4  ;;  %s664_s15 = scalar_lea.sflag [#allocation4], %s1302_s20  ;;  %s1572_s5 = int_to_ptr.vmem [resolvable:$true] %s680_s5 }
  0x7e   : > { %vm1361_vm4 = vcmp.lt.s32.totalorder %v278_v15, 15  ;;  %vm1368_vm6 = vcmp.ge.s32.totalorder %v278_v15, 1  ;;  %vm304_vm7 = vmand %vm300_vm1, %vm1357_vm3  ;;  %v345_v38 = vrot.slane %v341_v32, %v1384_v23  ;;  %v349_v39 = vrot.slane %v341_v32, %v1386_v24  ;;  %s992_s29 = scalar_lea.vmem %s1572_s5, 256  ;;  %p1709_p13 = scmp.ne.s32.totalorder %s1636_s27, 0 }
  0x7f   : > { %vm374_vm8 = vmpackc.low %vm1361_vm4, %vm368_vm5  ;;  %vm358_vm5 = vcmask 121856   ;;  %p993_p10 = scmp.ne.s32.totalorder %s1572_s5, %s992_s29  ;;  %s1097_s7 = smov [#allocation8]  }
  0x80   : > { %356 = vrot.lane.b32.xlu1 %v1321_v4, %s1089_s26  ;;  %vm310_vm9 = vmpackc.low %vm1368_vm6, %vm304_vm7  ;;  %v375_v25 = vsel %vm374_vm8, 65537, %v1087_v0  ;;  %vm1452_vm0 = vcmp.ne.s16.totalorder %v349_v39, 0  ;;  %vm452_vm7 = vcmask 924672  }
  0x81   : > { %vm404_vm11 = vmpackc.low %vm1368_vm6, %vm1357_vm3  ;;  %v311_v27 = vsel %vm310_vm9, 65537, %v1087_v0  ;;  %v379_v30 = vrot.slane %v375_v25, %v1384_v23  ;;  %v383_v31 = vrot.slane %v375_v25, %v1386_v24  ;;  %p994_p0 = pnand %p993_p10, %p1709_p13 }
  0x82   : > { %vm1395_vm14 = vmand %vm1629_vm10, %vm1368_vm6  ;;  %v405_v29 = vsel %vm404_vm11, 65537, %v1087_v0  ;;  %v315_v33 = vrot.slane %v311_v27, %v1384_v23  ;;  %v319_v34 = vrot.slane %v311_v27, %v1386_v24  ;;  %vm392_vm11 = vcmask 7168  }
  0x83   : > { %vm434_vm15 = vmpackc.low %vm1361_vm4, %vm1351_vm2  ;;  %v409_v36 = vrot.slane %v405_v29, %v1384_v23  ;;  %v413_v37 = vrot.slane %v405_v29, %v1386_v24  ;;  %vm1420_vm6 = vcmp.ne.s16.totalorder %v379_v30, 0  ;;  %p995_p7 = pneg %p994_p0 }
  0x84   : > { %288 = vrot.lane.b32.xlu1 %v1326_v5, %s1090_s21  ;;  %vm468_vm1 = vmpackc.low %vm1395_vm14, %vm1357_vm3  ;;  %v435_v35 = vsel %vm434_vm15, 65537, %v1087_v0  ;;  %vm1424_vm3 = vcmp.ne.s16.totalorder %v383_v31, 0  ;;  %vm1429_vm8 = vcmp.ne.s16.totalorder %v315_v33, 0  ;;  %vm1433_vm9 = vcmp.ne.s16.totalorder %v319_v34, 0 }
  0x85   : > { %v469_v40 = vsel %vm468_vm1, 65537, %v1087_v0  ;;  %v439_v43 = vrot.slane %v435_v35, %v1384_v23  ;;  %v1660_v44 = vsel %vm1429_vm8, 4294967295, %v1659_v44  ;;  %v1662_v45 = vsel %vm1433_vm9, 4294967295, %v1661_v45 }
  0x86   : > { %v443_v47 = vrot.slane %v435_v35, %v1386_v24  ;;  %vm1438_vm13 = vcmp.ne.s16.totalorder %v409_v36, 0  ;;  %vm1442_vm14 = vcmp.ne.s16.totalorder %v413_v37, 0  ;;  %v473_v50 = vrot.slane %v469_v40, %v1384_v23 }
  0x87   : > { %vm1448_vm1 = vcmp.ne.s16.totalorder %v345_v38, 0  ;;  %v477_v55 = vrot.slane %v469_v40, %v1386_v24  ;;  %vm1458_vm10 = vcmp.ne.s16.totalorder %v439_v43, 0  ;;  %vm1677_vm15 = vmmov 1  }
  0x88   : > { %290 = vrot.lane.b32.xlu1 %v1321_v4, %s1090_s21  ;;  %v1672_v57 = vsel %vm1458_vm10, 4294967295, %v1671_v57  ;;  %vm1464_vm12 = vcmp.ne.s16.totalorder %v443_v47, 0  ;;  %vm1470_vm9 = vcmp.ne.s16.totalorder %v473_v50, 0  ;;  %vm1678_vm10 = vcmp.lt.s32.totalorder %v1348_v12, 240 }
  0x89   : > { %vm498_vm8 = vmpackc.low %vm1678_vm10, %vm1677_vm15  ;;  %vm1683_vm10 = vcmask 130048  }
  0x8a   : > { %v499_v21 = vsel %vm498_vm8, 65537, %v1087_v0  ;;  %vm1691_vm8 = vcmask 1039360  }
  0x8b   : > { %v503_v37 = vrot.slane %v499_v21, %v1384_v23  ;;  %v507_v38 = vrot.slane %v499_v21, %v1386_v24 }
  0x8c   : > { %388 = vrot.lane.b32.xlu1 %v1326_v5, %s1091_s22 }
  0x90   : > { %390 = vrot.lane.b32.xlu1 %v1321_v4, %s1091_s22 }
  0x92   : > { %324 = vrot.lane.b32.xlu0 %v1326_v5, %s1088_s23  ;;  %s996_s23 = sshll.u32 %s1097_s7, 4  ;;  %s997_s23 = int_to_ptr.vmem [resolvable:$false] %s996_s23 }
  0x93   : > { %s998_s26 = scalar_lea.vmem %s997_s23, 512  ;;  %p999_p4 = scmp.lt.s32.totalorder %s1572_s5, %s997_s23 }
  0x94   : > { %420 = vrot.lane.b32.xlu1 %v1326_v5, %s1092_s8  ;;  %p1000_p1 = scmp.lt.s32.totalorder %s998_s26, %s992_s29 }
  0x96   : > { %418 = vrot.lane.b32.xlu0 %v1321_v4, %s1092_s8  ;;  %p1001_p3 = por %p1000_p1, %p999_p4 }
  0x98   : > { %450 = vrot.lane.b32.xlu1 %v1326_v5, %s1093_s9  ;;  %p1002_p2 = pnand %p1001_p3, %p995_p7 }
  0x9a   : > { %448 = vrot.lane.b32.xlu0 %v1321_v4, %s1093_s9 }
  0x9c   : > { %484 = vrot.lane.b32.xlu1 %v1326_v5, %s1094_s10 }
  0x9e   : > { %482 = vrot.lane.b32.xlu0 %v1321_v4, %s1094_s10 }
  0xa0   : > { %514 = vrot.lane.b32.xlu1 %v1326_v5, %s1095_s4 }
  0xa2   : > { %512 = vrot.lane.b32.xlu0 %v1321_v4, %s1095_s4 }
  0xea   : > { %v1346_v9 = vpop.permute.xlu1 %326 }
  0xee   : > { %v355_v11 = vpop.permute.xlu1 %354 }
  0xf2   : > { %v357_v14 = vpop.permute.xlu1 %356 }
  0xf3   : > { %v364_v51 = vsel %vm358_vm5, %v355_v11, %v357_v14  ;;  %v359_v56 = vsel %vm358_vm5, %v357_v14, %v355_v11  ;;  %vm580_vm5 = vcmask 1045504  }
  0xf4   : > { %v386_v62 = vsel %vm1420_vm6, %v364_v51, 0  ;;  %v387_v1 = vsel %vm1424_vm3, %v359_v56, 0  ;;  %vm1483_vm6 = vcmp.ne.s16.totalorder %v477_v55, 0  ;;  %vm1684_vm3 = vmmov %vm1683_vm10 }
  0xf6   : > { %v1355_v17 = vpop.permute.xlu1 %288 }
  0xfa   : > { %v291_v22 = vpop.permute.xlu1 %290 }
  0xfe   : > { %v389_v28 = vpop.permute.xlu1 %388 }
 0x102   : > { %v391_v46 = vpop.permute.xlu1 %390 }
 0x103   : > { %v393_v58 = vsel %vm392_vm11, %v391_v46, %v389_v28  ;;  %v398_v59 = vsel %vm392_vm11, %v389_v28, %v391_v46  ;;  %vm1679_vm11 = vcmask 138240  }
 0x104   : > { %v293_v2 = vsel %vm1679_vm11, %v291_v22, %v1355_v17  ;;  %vm1680_vm2 = vmmov %vm1679_vm11  ;;  %v416_v10 = vsel %vm1438_vm13, %v398_v59, 0  ;;  %v417_v11 = vsel %vm1442_vm14, %v393_v58, 0  ;;  %vm1688_vm13 = vnez %v1660_v44 }
 0x105   : > { %v298_v6 = vsel %vm1680_vm2, %v1355_v17, %v291_v22  ;;  %vm1685_vm2 = vcmp.lt.s32.totalorder %v1348_v12, 240  ;;  %v550_v17 = vrot.slane %v386_v62, 4  ;;  %v551_v22 = vrot.slane %v387_v1, 4 }
 0x106   : > { %v421_v60 = vpop.permute.xlu1 %420  ;;  %vm1499_vm15 = vmand %vm1685_vm2, %vm1361_vm4  ;;  %v322_v12 = vsel %vm1688_vm13, %v298_v6, 0  ;;  %vm1689_vm4 = vnez %v1662_v45  ;;  %v554_v27 = vrot.slane %v416_v10, 2  ;;  %v555_v28 = vrot.slane %v417_v11, 2 }
 0x107   : > { %v323_v19 = vsel %vm1689_vm4, %v293_v2, 0  ;;  %vm1690_vm14 = vnez %v1646_v16  ;;  %vm1693_vm11 = vcmask 1041408   ;;  %vm486_vm13 = vcmask 916480  }
 0x108   : > { %vm509_vm4 = vcmp.ne.s16.totalorder %v507_v38, 0 }
 0x109   : > { %v268_v52 = vpop.xlane.xlu0 %267 }
 0x10a   : > { %v269_v25 = vadd.f32 1e-08, %v268_v52  ;;  %v451_v30 = vpop.permute.xlu1 %450 }
 0x10c   : > { %902 = vrsqrt.f32 %v269_v25 }
 0x10d   : > { %v325_v7 = vpop.permute.xlu0 %324 }
 0x10e   : > { %v329_v13 = vsel %vm1683_vm10, %v1346_v9, %v325_v7  ;;  %v334_v14 = vsel %vm1684_vm3, %v325_v7, %v1346_v9  ;;  %vm1694_vm10 = vmmov %vm1693_vm11  ;;  %vm1695_vm3 = vcmask 1043456   ;;  %v485_v47 = vpop.permute.xlu1 %484 }
 0x10f   : > { %v352_v18 = vsel %vm1448_vm1, %v334_v14, 0  ;;  %v353_v20 = vsel %vm1452_vm0, %v329_v13, 0  ;;  %vm530_vm0 = vmpackc.low %vm1499_vm15, %vm1690_vm14  ;;  %vm1697_vm15 = vnez %v1672_v57 }
 0x110   : > { %v546_v9 = vrot.slane %v352_v18, 6  ;;  %v547_v26 = vrot.slane %v353_v20, 6  ;;  %vm1692_vm1 = vmmov %vm1691_vm8  ;;  %v531_v40 = vsel %vm530_vm0, 65537, %v1087_v0 }
 0x111   : > { %v419_v29 = vpop.permute.xlu0 %418  ;;  %vm1696_vm2 = vmmov %vm1695_vm3  ;;  %v539_v48 = vrot.slane %v531_v40, %v1386_v24  ;;  %v535_v49 = vrot.slane %v531_v40, %v1384_v23 }
 0x112   : > { %v423_v31 = vsel %vm1691_vm8, %v419_v29, %v421_v60  ;;  %v428_v32 = vsel %vm1692_vm1, %v421_v60, %v419_v29  ;;  %v574_v33 = vsel %vm1693_vm11, %v323_v19, %v547_v26  ;;  %v571_v34 = vsel %vm1694_vm10, %v322_v12, %v546_v9  ;;  %v515_v59 = vpop.permute.xlu1 %514  ;;  %vm1702_vm14 = vmmov %vm1694_vm10 }
 0x113   : > { %v579_v35 = vsel %vm1695_vm3, %v574_v33, %v551_v22  ;;  %v577_v36 = vsel %vm1696_vm2, %v571_v34, %v550_v17  ;;  %v446_v41 = vsel %vm1697_vm15, %v423_v31, 0  ;;  %v447_v42 = vsel %vm1464_vm12, %v428_v32, 0  ;;  %vm1703_vm0 = vmmov %vm1694_vm10 }
 0x114   : > { %v585_v16 = vsel %vm580_vm5, %v579_v35, %v555_v28  ;;  %v582_v39 = vsel %vm580_vm5, %v577_v36, %v554_v27  ;;  %v558_v50 = vrot.slane %v446_v41, 6  ;;  %v559_v51 = vrot.slane %v447_v42, 6  ;;  %vm1704_vm8 = vmmov %vm1696_vm2 }
 0x115   : > { %612 = vmatprep.subr.bf16.mxu0 %v585_v16  ;;  %v449_v43 = vpop.permute.xlu0 %448  ;;  %vm508_vm12 = vcmp.ne.s16.totalorder %v503_v37, 0  ;;  %vm1705_vm1 = vmmov %vm1696_vm2 }
 0x116   : > { %v453_v44 = vsel %vm452_vm7, %v449_v43, %v451_v30  ;;  %v458_v45 = vsel %vm452_vm7, %v451_v30, %v449_v43  ;;  %613 = vmatpush1.bf16.msra.mxu0 %v582_v39  ;;  %vm516_vm7 = vcmask 908288   ;;  %v592_v62 = vsel %vm1702_vm14, %v1326_v5, %v559_v51  ;;  %v903_v7 = vpop.eup %902  ;;  %vm1706_vm11 = vmmov %vm1703_vm0 }
 0x117   : > { %v480_v46 = vsel %vm1470_vm9, %v453_v44, 0  ;;  %v481_v0 = vsel %vm1483_vm6, %v458_v45, 0  ;;  %vm1539_vm9 = vcmp.ne.s16.totalorder %v539_v48, 0  ;;  %vm1543_vm6 = vcmp.ne.s16.totalorder %v535_v49, 0  ;;  %vm1707_vm10 = vmmov %vm1703_vm0 }
 0x118   : > { %v562_v52 = vrot.slane %v480_v46, 4  ;;  %v563_v53 = vrot.slane %v481_v0, 4  ;;  %v589_v63 = vsel %vm1703_vm0, %v1321_v4, %v558_v50  ;;  %v271_v15 = vmul.f32 %v903_v7, %v1319_v3 }
 0x119   : > { %v483_v54 = vpop.permute.xlu0 %482 }
 0x11a   : > { %v487_v55 = vsel %vm486_vm13, %v483_v54, %v485_v47  ;;  %v492_v56 = vsel %vm486_vm13, %v485_v47, %v483_v54  ;;  %v596_v1 = vsel %vm1704_vm8, %v592_v62, %v563_v53  ;;  %v594_v2 = vsel %vm1705_vm1, %v589_v63, %v562_v52 }
 0x11b   : > { %v510_v57 = vsel %vm508_vm12, %v487_v55, 0  ;;  %v511_v58 = vsel %vm509_vm4, %v492_v56, 0  ;;  %v272_v17 = vpack.c.bf16 %v271_v15, %v271_v15 }
 0x11c   : > { %v566_v23 = vrot.slane %v510_v57, 2  ;;  %v567_v61 = vrot.slane %v511_v58, 2 }
 0x11d   : > { %v513_v6 = vpop.permute.xlu0 %512 }
 0x11e   : > { %v601_v8 = vsel %vm580_vm5, %v596_v1, %v567_v61  ;;  %v598_v10 = vsel %vm580_vm5, %v594_v2, %v566_v23  ;;  %v517_v11 = vsel %vm516_vm7, %v513_v6, %v515_v59  ;;  %v522_v13 = vsel %vm516_vm7, %v515_v59, %v513_v6 }
 0x11f   : > { %614 = vmatprep.subr.bf16.mxu0 %v601_v8  ;;  %v543_v4 = vsel %vm1539_vm9, %v522_v13, 0  ;;  %v542_v5 = vsel %vm1543_vm6, %v517_v11, 0  ;;  %vm1708_vm5 = vcmask 293888  }
 0x120   : > { %615 = vmatpush1.bf16.msra.mxu0 %v598_v10  ;;  %v607_v14 = vsel %vm1707_vm10, %v542_v5, 0 }
 0x121   : > { %805 = vmatprep.subr.msk.bf16.mxu0 %vm1706_vm11, %v543_v4 }
 0x124   : > { %617 = vmatpush1.bf16.msra.mxu0 %v607_v14 }
 0x127   : > { %806 = vmatmul.mubr.msk.bf16.vlgmr.msra.gmra.mrb[0].mxu0 %vm1708_vm5, %v272_v17 }
 0x1fa   : > { %v646_v18 = vpop.f32.mrb[0].mxu0 }
 0x1fb   : > { %vm653_vm3 = vcmp.ge.f32.partialorder %v646_v18, 0.0  ;;  %v655_v20 = vmul.f32 1.4142135, %v646_v18  ;;  %v657_v21 = vmul.f32 0.28284273, %v646_v18  ;;  %v648_v22 = vpop.f32.mrb[1].mxu0 }
 0x1fc   : > { %vm654_vm2 = vcmp.ge.f32.partialorder %v648_v22, 0.0  ;;  %v656_v25 = vmul.f32 1.4142135, %v648_v22  ;;  %v658_v9 = vmul.f32 0.28284273, %v648_v22  ;;  %v650_v26 = vpop.f32.mrb[2].mxu0 }
 0x1fd   : > { %v659_v3 = vsel %vm653_vm3, %v655_v20, %v657_v21  ;;  %v651_v12 = vpop.f32.mrb[3].mxu0 }
 0x1fe   : > { %661 = vst [vmem:[%s251_s0] sm:$0xff] %v659_v3  ;;  %v660_v19 = vsel %vm654_vm2, %v656_v25, %v658_v9 }
 0x1ff   : > { %662 = vst [vmem:[%s251_s0 + $0x8] sm:$0xff] %v660_v19 }
 0x200   : > { %1005 = shalt.err (!%p1002_p2)
}
 0x201   : > { %s1006_s20 = scalar_lea.hbm %s1570_s6, 256  ;;  %s1010_s8 = scalar_lea.hbm %s1622_s3, 512 }
 0x202   : > { %p1007_p5 = scmp.ne.s32.totalorder %s1570_s6, %s1006_s20  ;;  %p1011_p6 = scmp.lt.u32.totalorder %s1570_s6, %s1622_s3 }
 0x203   : > { %p1012_p8 = scmp.lt.u32.totalorder %s1010_s8, %s1006_s20  ;;  %p1014_p10 = scmp.lt.u32.totalorder %s1006_s20, %s1570_s6 }
 0x204   : > { %p1008_p12 = pnand %p1007_p5, %p1709_p13 }
 0x205   : > { %p1013_p11 = por %p1012_p8, %p1011_p6 }
 0x206   : > { %p1009_p9 = pneg %p1008_p12 }
 0x207   : > { %p1015_p0 = por %p1014_p10, %p1013_p11 }
 0x209   : > { %p1016_p7 = pnand %p1015_p0, %p1009_p9 }
 0x20b   : > { %1019 = shalt.err (!%p1016_p7)
}
 0x20c   : > { %822 = dma.vmem_to_hbm [thread:$0]  (%p1709_p13), %s1572_s5, 256, %s1570_s6, %s664_s15  }
 0x20d PF: > { %s692_s4 = sand.u32 1, %s1062_s12   ;;  %p1710_p4 = scmp.ne.s32.totalorder %s1637_s28, 0 }
 0x20e   : > { %p1711_p1 = scmp.ge.s32.totalorder %s1082_s17, 2  ;;  %s693_s19 = scalar_lea.sflag [#allocation4], %s692_s4 }
 0x210   : > { %p836_p3 = pnand %p1711_p1, %p1710_p4 }
 0x212   : > { %1057 = dma.done.wait (!%p836_p3), %s693_s19, 256  }
 0x213   : > { %1059 = vsyncadd (!%p836_p3), %s693_s19, 4294967040  ;;  %s20_s17 = sadd.s32 1, %s1082_s17   ;;  %s1712_s12 = smov %s1066_s13 }
 0x214   : > { %p17_p2 = scmp.ge.s32.totalorder %s20_s17, 4   ;;  %s1713_s13 = smov %s1070_s14 }
 0x215   : > { %s1714_s14 = smov %s1166_s24  ;;  %s1715_s15 = smov %s1078_s16 }
 0x216   : > { %s1716_s16 = smov %s1718_s18  ;;  %19 = sbr.rel (!%p17_p2) target bundleno = 9 (0x9), region = 93 }
 0x21d   :  { %698 = vsyncpa [#allocation3], 1 }
 0x21e   :  { %700 = vsyncpa [#allocation3 + $0x1], 1 }
 0x21f   :  { %701 = vsyncpa [#allocation6], 1 }
 0x220   :  { %702 = vsyncpa [#allocation4], 1 }
 0x221   :  { %704 = vsyncpa [#allocation4 + $0x1], 1 }

</bundles_post_ra>
